<compile_context>
chip_gen: v5e
topology: v5e:2x2
jax: 0.10.0
libtpu: 0.0.40
codegen_flags: <defaults>
</compile_context>

<pallas_src>
import functools

import jax
import jax.numpy as jnp
from jax.experimental import pallas as pl
from jax.experimental.pallas import tpu as pltpu


def _round_up(x, m):
    return ((x + m - 1) // m) * m


def _pick_tile_rows(n, d, n_row_streams):
    """Row-tile size: big enough to amortize per-step overhead, small enough
    that the double-buffered row streams stay well under the VMEM budget."""
    n8 = _round_up(max(n, 1), 8)
    budget = 4 * 1024 * 1024                    # bytes for all row streams
    per_row = 2 * n_row_streams * d * 2          # 2x double-buffer, bf16
    tm = budget // max(per_row, 1)
    tm = max(512, min(4096, tm))
    tm = (tm // 8) * 8                           # sublane-aligned
    return min(tm, n8)


def _q_kernel_shared_state(q6_ref, embed_ref, t7_ref, t5b_ref, q_ref):
    # q6_ref:  SMEM [1,1] f32 (row-constant relu(state@theta6)@theta5[:D])
    # embed_ref: [TM,D] bf16   t7_ref: [D,D] bf16
    # t5b_ref: [1,D] f32       q_ref:  [TM,1] f32
    h7 = jnp.dot(embed_ref[...], t7_ref[...],
                 preferred_element_type=jnp.float32)
    r7 = jnp.maximum(h7, 0.0)
    # VPU multiply + XLU lane reduction instead of a width-1 MXU matvec.
    q = jnp.sum(r7 * t5b_ref[...], axis=-1, keepdims=True) + q6_ref[0, 0]
    q_ref[...] = q.astype(q_ref.dtype)


def _q_kernel_per_row_state(state_ref, embed_ref, t6_ref, t7_ref,
                            t5a_ref, t5b_ref, q_ref):
    # state_ref/embed_ref: [TM,D] bf16   t6/t7: [D,D] bf16
    # t5a/t5b: [1,D] f32                 q_ref: [TM,1] f32
    h6 = jnp.dot(state_ref[...], t6_ref[...],
                 preferred_element_type=jnp.float32)
    h7 = jnp.dot(embed_ref[...], t7_ref[...],
                 preferred_element_type=jnp.float32)
    r6 = jnp.maximum(h6, 0.0)
    r7 = jnp.maximum(h7, 0.0)
    q = jnp.sum(r6 * t5a_ref[...] + r7 * t5b_ref[...],
                axis=-1, keepdims=True)
    q_ref[...] = q.astype(q_ref.dtype)


@jax.jit
def qfunction_forward(state_embed, embed, theta5, theta6, theta7):
    """Pallas implementation of QFunction.forward.

    state_embed: [B, D] with B == 1 or B == N
    embed:       [N, D]
    theta5:      [2D, 1], theta6/theta7: [D, D]
    returns q:   [N, 1] float32
    """
    n, d = embed.shape
    assert theta5.shape == (2 * d, 1)
    compute_dtype = jnp.bfloat16
    itemsize = jnp.dtype(compute_dtype).itemsize
    shared_state = state_embed.shape[0] == 1

    # theta5 halves as lane-dense [1, D] rows (stay in f32, used on the VPU).
    t5a = theta5[:d, 0].reshape(1, d).astype(jnp.float32)
    t5b = theta5[d:, 0].reshape(1, d).astype(jnp.float32)

    # Row tiling; pad N up to a multiple of the tile with zero rows
    # (relu(0 @ theta7) contributes 0 and padded rows are sliced off).
    tm = _pick_tile_rows(n, d, 1 if shared_state else 2)
    n_pad = _round_up(n, tm)
    grid = (n_pad // tm,)

    embed_c = embed.astype(compute_dtype)
    if n_pad != n:
        embed_c = jnp.pad(embed_c, ((0, n_pad - n), (0, 0)))
    t7_c = theta7.astype(compute_dtype)

    row_spec = pl.BlockSpec((tm, d), lambda i: (i, 0))
    w_spec = pl.BlockSpec((d, d), lambda i: (0, 0))     # weights stay resident
    t5_spec = pl.BlockSpec((1, d), lambda i: (0, 0))
    out_spec = pl.BlockSpec((tm, 1), lambda i: (i, 0))
    cparams = pltpu.CompilerParams(dimension_semantics=("parallel",))

    if shared_state:
        # Shared state row: its contribution to q is a single scalar, computed
        # once outside the kernel and added per row from SMEM.
        h6 = jnp.dot(state_embed.astype(compute_dtype),
                     theta6.astype(compute_dtype),
                     preferred_element_type=jnp.float32)          # [1, D]
        q6 = jnp.sum(jnp.maximum(h6, 0.0) * t5a,
                     axis=-1, keepdims=True)                       # [1, 1] f32

        cost = pl.CostEstimate(
            flops=2 * n_pad * d * d + 4 * n_pad * d,
            transcendentals=0,
            bytes_accessed=(n_pad * d * itemsize + d * d * itemsize
                            + d * 4 + n_pad * 4 + 4),
        )
        q_pad = pl.pallas_call(
            _q_kernel_shared_state,
            out_shape=jax.ShapeDtypeStruct((n_pad, 1), jnp.float32),
            grid=grid,
            in_specs=[
                pl.BlockSpec(memory_space=pltpu.MemorySpace.SMEM),  # q6 scalar
                row_spec,   # embed tile
                w_spec,     # theta7
                t5_spec,    # theta5[D:] row
            ],
            out_specs=out_spec,
            compiler_params=cparams,
            cost_estimate=cost,
        )(q6, embed_c, t7_c, t5b)
    else:
        assert state_embed.shape == (n, d)
        state_c = state_embed.astype(compute_dtype)
        if n_pad != n:
            state_c = jnp.pad(state_c, ((0, n_pad - n), (0, 0)))
        t6_c = theta6.astype(compute_dtype)

        cost = pl.CostEstimate(
            flops=4 * n_pad * d * d + 8 * n_pad * d,
            transcendentals=0,
            bytes_accessed=(2 * n_pad * d * itemsize + 2 * d * d * itemsize
                            + 2 * d * 4 + n_pad * 4),
        )
        q_pad = pl.pallas_call(
            _q_kernel_per_row_state,
            out_shape=jax.ShapeDtypeStruct((n_pad, 1), jnp.float32),
            grid=grid,
            in_specs=[row_spec, row_spec, w_spec, w_spec, t5_spec, t5_spec],
            out_specs=out_spec,
            compiler_params=cparams,
            cost_estimate=cost,
        )(state_c, embed_c, t6_c, t7_c, t5a, t5b)

    return q_pad[:n]


def xavier_uniform(key, shape, dtype=jnp.float32):
    # PyTorch xavier_uniform_ for a 2-D tensor: fan_out, fan_in = shape
    fan_out, fan_in = shape
    bound = (6.0 / (fan_in + fan_out)) ** 0.5
    return jax.random.uniform(key, shape, dtype, minval=-bound, maxval=bound)


if __name__ == "__main__":
    dim_embed = 32
    n_nodes = 8

    key = jax.random.PRNGKey(0)
    k5, k6, k7, ks, ke, ks2 = jax.random.split(key, 6)

    theta5 = xavier_uniform(k5, (2 * dim_embed, 1))
    theta6 = xavier_uniform(k6, (dim_embed, dim_embed))
    theta7 = xavier_uniform(k7, (dim_embed, dim_embed))

    # Single-row state embedding (exercises the expand/B==1 fast path) and
    # N node embeddings.
    state_embed = jax.random.normal(ks, (1, dim_embed), jnp.float32)
    embed = jax.random.normal(ke, (n_nodes, dim_embed), jnp.float32)

    q1 = jax.block_until_ready(
        qfunction_forward(state_embed, embed, theta5, theta6, theta7))

    # Per-row state embedding (B == N branch).
    state_rows = jax.random.normal(ks2, (n_nodes, dim_embed), jnp.float32)
    q2 = jax.block_until_ready(
        qfunction_forward(state_rows, embed, theta5, theta6, theta7))

    # References.  (a) same math as the PyTorch module with the kernel's
    # bf16-cast inputs + f32 accumulation (tight check), (b) full-f32 module
    # math (loose check, bounds the bf16 quantization error).
    def ref_bf16(state_e, emb):
        se = state_e.astype(jnp.bfloat16)
        eb = emb.astype(jnp.bfloat16)
        t6s = jnp.dot(se, theta6.astype(jnp.bfloat16),
                      preferred_element_type=jnp.float32)
        if state_e.shape[0] == 1:
            t6s = jnp.broadcast_to(t6s, (emb.shape[0], dim_embed))
        t7m = jnp.dot(eb, theta7.astype(jnp.bfloat16),
                      preferred_element_type=jnp.float32)
        concat = jnp.concatenate([t6s, t7m], axis=1)
        relu = jnp.maximum(concat, 0.0)
        return jnp.sum(relu * theta5[:, 0][None, :], axis=-1, keepdims=True)

    def ref_f32(state_e, emb):
        t6s = state_e @ theta6
        if state_e.shape[0] == 1:
            t6s = jnp.broadcast_to(t6s, (emb.shape[0], dim_embed))
        t7m = emb @ theta7
        concat = jnp.concatenate([t6s, t7m], axis=1)
        return jnp.maximum(concat, 0.0) @ theta5

    r1b, r2b = ref_bf16(state_embed, embed), ref_bf16(state_rows, embed)
    r1f, r2f = ref_f32(state_embed, embed), ref_f32(state_rows, embed)

    assert q1.shape == (n_nodes, 1) and q2.shape == (n_nodes, 1)
    assert jnp.allclose(q1, r1b, atol=1e-3, rtol=1e-3), jnp.max(jnp.abs(q1 - r1b))
    assert jnp.allclose(q2, r2b, atol=1e-3, rtol=1e-3), jnp.max(jnp.abs(q2 - r2b))
    assert jnp.allclose(q1, r1f, atol=7e-2, rtol=7e-2), jnp.max(jnp.abs(q1 - r1f))
    assert jnp.allclose(q2, r2f, atol=7e-2, rtol=7e-2), jnp.max(jnp.abs(q2 - r2f))

    print("KERNEL_OK")
</pallas_src>

<mosaic_0001>
module attributes {stable_mosaic.version = 11 : i64} {
  func.func @_q_kernel_shared_state(%arg0: i32, %arg1: memref<1x1xf32, #tpu.memory_space<smem>>, %arg2: memref<8x32xbf16, #tpu.memory_space<vmem>>, %arg3: memref<32x32xbf16, #tpu.memory_space<vmem>>, %arg4: memref<1x32xf32, #tpu.memory_space<vmem>>, %arg5: memref<8x1xf32, #tpu.memory_space<vmem>>) attributes {dimension_semantics = [#tpu.dimension_semantics<parallel>], iteration_bounds = array<i64: 1>, scalar_prefetch = 0 : i64, scratch_operands = 0 : i64, tpu.core_type = #tpu.core_type<tc>, window_params = [{transform_indices = @transform_0, window_bounds = array<i64: 1, 1>}, {transform_indices = @transform_1, window_bounds = array<i64: 8, 32>}, {pipeline_mode = #tpu.pipeline_mode<synchronous>, transform_indices = @transform_2, window_bounds = array<i64: 32, 32>}, {pipeline_mode = #tpu.pipeline_mode<synchronous>, transform_indices = @transform_3, window_bounds = array<i64: 1, 32>}, {transform_indices = @transform_4, window_bounds = array<i64: 8, 1>}]} {
    %c0 = arith.constant 0 : index
    %c0_0 = arith.constant 0 : index
    %0 = vector.load %arg2[%c0, %c0_0] : memref<8x32xbf16, #tpu.memory_space<vmem>>, vector<8x32xbf16>
    %c0_1 = arith.constant 0 : index
    %c0_2 = arith.constant 0 : index
    %1 = vector.load %arg3[%c0_1, %c0_2] : memref<32x32xbf16, #tpu.memory_space<vmem>>, vector<32x32xbf16>
    %cst = arith.constant dense<0.000000e+00> : vector<8x32xf32>
    %2 = tpu.matmul %0, %1, %cst {dimension_numbers = #tpu.dot_dimension_numbers<[1], [0], [0], [1], [0, 0, 1, 1], [], []>} : vector<8x32xbf16>, vector<32x32xbf16>, vector<8x32xf32> -> vector<8x32xf32>
    %cst_3 = arith.constant 0.000000e+00 : f32
    %3 = vector.broadcast %cst_3 : f32 to vector<8x32xf32>
    %4 = arith.maximumf %2, %3 : vector<8x32xf32>
    %c0_4 = arith.constant 0 : index
    %c0_5 = arith.constant 0 : index
    %5 = vector.load %arg4[%c0_4, %c0_5] : memref<1x32xf32, #tpu.memory_space<vmem>>, vector<1x32xf32>
    %6 = vector.broadcast %5 : vector<1x32xf32> to vector<8x32xf32>
    %7 = arith.mulf %4, %6 : vector<8x32xf32>
    %cst_6 = arith.constant dense<0.000000e+00> : vector<8xf32>
    %8 = vector.multi_reduction <add>, %7, %cst_6 [1] : vector<8x32xf32> to vector<8xf32>
    %9 = vector.shape_cast %8 : vector<8xf32> to vector<8x1xf32>
    %c0_7 = arith.constant 0 : index
    %c0_8 = arith.constant 0 : index
    %10 = memref.load %arg1[%c0_7, %c0_8] : memref<1x1xf32, #tpu.memory_space<smem>>
    %11 = vector.broadcast %10 : f32 to vector<8x1xf32>
    %12 = arith.addf %9, %11 : vector<8x1xf32>
    %c0_9 = arith.constant 0 : index
    %c0_10 = arith.constant 0 : index
    %13 = vector.load %arg5[%c0_9, %c0_10] : memref<8x1xf32, #tpu.memory_space<vmem>>, vector<8x1xf32>
    tpu.vector_store %arg5[%c0_9, %c0_10], %12 {strides = array<i32>} : memref<8x1xf32, #tpu.memory_space<vmem>>, vector<8x1xf32>,
    return
  }
  func.func @transform_0(%arg0: i32) -> (i32, i32) {
    %c0_i32 = arith.constant 0 : i32
    %c0_i32_0 = arith.constant 0 : i32
    %c0_i32_1 = arith.constant 0 : i32
    return %c0_i32, %c0_i32_0 : i32, i32
  }
  func.func @transform_1(%arg0: i32) -> (i32, i32) {
    %c0_i32 = arith.constant 0 : i32
    %c0_i32_0 = arith.constant 0 : i32
    return %arg0, %c0_i32 : i32, i32
  }
  func.func @transform_2(%arg0: i32) -> (i32, i32) {
    %c0_i32 = arith.constant 0 : i32
    %c0_i32_0 = arith.constant 0 : i32
    %c0_i32_1 = arith.constant 0 : i32
    return %c0_i32, %c0_i32_0 : i32, i32
  }
  func.func @transform_3(%arg0: i32) -> (i32, i32) {
    %c0_i32 = arith.constant 0 : i32
    %c0_i32_0 = arith.constant 0 : i32
    %c0_i32_1 = arith.constant 0 : i32
    return %c0_i32, %c0_i32_0 : i32, i32
  }
  func.func @transform_4(%arg0: i32) -> (i32, i32) {
    %c0_i32 = arith.constant 0 : i32
    %c0_i32_0 = arith.constant 0 : i32
    return %arg0, %c0_i32 : i32, i32
  }
}

</mosaic_0001>

<bundles_post_ra>
// kernel: qfunction_forward.1
= control target key start
LH: loop header
LB: loop body
LE: loop exit
PB: predicated region body
PF: predicated region fallthrough
CT: control target
= control target key end

     0   :  { %vm36_vm0 = vcmask 261120   ;;  %vm65_vm1 = vcmask 7168   ;;  %s126_s2 = inlined_call_operand.vmem [shape: bf16[32,32], index: 2, kind: input, shape index: {}]   ;;  %s127_s1 = inlined_call_operand.vmem [shape: bf16[8,32], index: 1, kind: input, shape index: {}]   ;;  %s128_s3 = inlined_call_operand.vmem [shape: f32[1,32], index: 3, kind: input, shape index: {}]   ;;  %s129_s0 = inlined_call_operand.<no memory space> [shape: f32[1,1], index: 0, kind: input, shape index: {}]   ;;  %s130_s4 = inlined_call_operand.vmem [shape: f32[8,1], index: 4, kind: output, shape index: {}]  }
   0x1   :  { %v81_v0 = vld [vmem:[%s126_s2 + $0x8] sm:$0xff]  ;;  %v80_v1 = vld [vmem:[%s126_s2] sm:$0xff]  ;;  %v63_v9 = vstv %s129_s0 }
   0x2   :  { %46 = vmatpush.bf16.msra.mxu0 %v81_v0  ;;  %v19_v2 = vld [vmem:[%s127_s1] sm:$0xf] }
   0x3   :  { %v82_v3 = vld [vmem:[%s128_s3] ss:$0 sm:$0xff] }
   0x6   :  { %47 = vmatpush.bf16.msra.mxu0 %v80_v1 }
   0x9   :  { %79 = vmatmul.msk.bf16.vlgmr.msra.gmra.mxu0 %vm36_vm0, %v19_v2 }
  0x86   :  { %v49_v4 = vpop.f32.mrf.mxu0 }
  0x87   :  { %v53_v5 = vmax.f32 %v49_v4, 0.0 }
  0x89   :  { %v58_v6 = vmul.f32 %v82_v3, %v53_v5 }
  0x8b   :  { %v59_v7 = vsel %vm36_vm0, %v58_v6, 0.0 }
  0x8c   :  { %60 = vadd.xlane.f32.xlu0 %v59_v7 }
  0x8e   :  { %v51_v8 = vpop.f32.mrf.mxu0 }
  0xff   :  { %v61_v10 = vpop.xlane.xlu0 %60 }
 0x100   :  { %v64_v11 = vadd.f32 %v63_v9, %v61_v10 }
 0x102   :  { %66 = vst.msk [vmem:[%s130_s4] sm:$0xff] %vm65_vm1, %v64_v11 }

</bundles_post_ra>
